<compile_context>
chip_gen: v5e
topology: v5e:2x2
jax: 0.10.0
libtpu: 0.0.40
codegen_flags: <defaults>
</compile_context>

<pallas_src>
import math
from functools import partial

import numpy as np
import jax
import jax.numpy as jnp
from jax import lax
from jax.experimental import pallas as pl
from jax.experimental.pallas import tpu as pltpu


def _round_up(x, m):
    return ((x + m - 1) // m) * m


def mha_kernel(x_ref, wq_ref, wk_ref, wv_ref, wo_ref, bias_ref, cos_ref, sin_ref,
               out_ref, qrot_sc, k_sc, vrot_sc, cat_sc, *, H, half, tq):
    """grid = (B, S_pad // tq).  Scratch carries per-batch projections."""
    qi = pl.program_id(1)
    E = wq_ref.shape[0]
    E2 = E // 2

    # ---- per-batch prologue: fused projections + head-wide RoPE → scratch ----
    @pl.when(qi == 0)
    def _():
        x = x_ref[0]                                     # (S_pad, E) bf16
        c = cos_ref[...]                                 # (S_pad, E/2) f32
        s = sin_ref[...]
        q = jnp.dot(x, wq_ref[...], preferred_element_type=jnp.float32)
        k = jnp.dot(x, wk_ref[...], preferred_element_type=jnp.float32)
        v = jnp.dot(x, wv_ref[...], preferred_element_type=jnp.float32)
        q1, q2 = q[:, :E2], q[:, E2:]
        v1, v2 = v[:, :E2], v[:, E2:]
        # columns are pre-grouped [all even | all odd]; RoPE = half-split FMA
        qrot_sc[:, :E2] = (q1 * c - q2 * s).astype(jnp.bfloat16)
        qrot_sc[:, E2:] = (q1 * s + q2 * c).astype(jnp.bfloat16)
        vrot_sc[:, :E2] = (v1 * c - v2 * s).astype(jnp.bfloat16)
        vrot_sc[:, E2:] = (v1 * s + v2 * c).astype(jnp.bfloat16)
        k_sc[...] = k.astype(jnp.bfloat16)

    # ---- per q-tile attention ----
    r0 = pl.multiple_of(qi * tq, tq)
    q_tile = qrot_sc[pl.ds(r0, tq), :]                   # (tq, E) bf16
    bias = bias_ref[...].astype(jnp.float32)             # (tq, S_pad)

    NT = (((1,), (1,)), ((), ()))                        # contract lane dims (q·kᵀ)
    for h in range(H):
        c0 = h * half                                    # even-feature block
        c1 = E2 + h * half                               # odd-feature block
        q1 = q_tile[:, c0:c0 + half]
        q2 = q_tile[:, c1:c1 + half]
        k1 = k_sc[:, c0:c0 + half]
        k2 = k_sc[:, c1:c1 + half]
        # bf16 MXU matmuls, f32 accumulation (scale already folded into W_Q)
        scores = (lax.dot_general(q1, k1, NT, preferred_element_type=jnp.float32) +
                  lax.dot_general(q2, k2, NT, preferred_element_type=jnp.float32))
        scores = scores + bias
        m = jnp.max(scores, axis=-1, keepdims=True)
        e = jnp.exp(scores - m)                          # TODO(synk): bf16 exp on v6e/v7x
        l = jnp.sum(e, axis=-1, keepdims=True)
        inv = pl.reciprocal(l, approx=True)
        p = e.astype(jnp.bfloat16)
        o1 = jnp.dot(p, vrot_sc[:, c0:c0 + half], preferred_element_type=jnp.float32)
        o2 = jnp.dot(p, vrot_sc[:, c1:c1 + half], preferred_element_type=jnp.float32)
        # write into the concat scratch instead of jnp.concatenate over heads
        cat_sc[:, c0:c0 + half] = (o1 * inv).astype(jnp.bfloat16)
        cat_sc[:, c1:c1 + half] = (o2 * inv).astype(jnp.bfloat16)

    out = jnp.dot(cat_sc[...], wo_ref[...], preferred_element_type=jnp.float32)
    out_ref[0] = out.astype(out_ref.dtype)


def multi_head_attention(x, w_q, w_k, w_v, w_o, mask):
    B, S, E = x.shape
    H, _, d_h = w_q.shape
    assert d_h % 2 == 0 and H * d_h == E
    half = d_h // 2
    E2 = E // 2

    # ---- query tile size / padded sequence length (no whole-S fallback) ----
    if S <= 256:
        tq = _round_up(S, 8)
        S_pad = tq
    else:
        tq = 256
        S_pad = _round_up(S, tq)
    nq = S_pad // tq

    # ---- wrapper-side layout: head-wide deinterleave [all even | all odd] ----
    def fuse(w):                                  # (H, E, d_h) -> (E, E)
        we = jnp.moveaxis(w[:, :, 0::2], 0, 1).reshape(E, H * half)
        wo_ = jnp.moveaxis(w[:, :, 1::2], 0, 1).reshape(E, H * half)
        return jnp.concatenate([we, wo_], axis=1)

    inv_sqrt_dh = 1.0 / math.sqrt(d_h)
    wq_f = (fuse(w_q) * inv_sqrt_dh).astype(jnp.bfloat16)   # fold 1/sqrt(d_h)
    wk_f = fuse(w_k).astype(jnp.bfloat16)
    wv_f = fuse(w_v).astype(jnp.bfloat16)

    idx_even = (np.arange(H)[:, None] * d_h + np.arange(0, d_h, 2)[None, :]).reshape(-1)
    idx_odd = (np.arange(H)[:, None] * d_h + np.arange(1, d_h, 2)[None, :]).reshape(-1)
    row_perm = np.concatenate([idx_even, idx_odd]).astype(np.int32)
    wo_p = w_o[row_perm, :].astype(jnp.bfloat16)            # matching W_O row perm

    # ---- RoPE tables over padded length, tiled head-wide to (S_pad, E/2) ----
    pos = jnp.arange(S_pad, dtype=jnp.float32)
    p = jnp.arange(1, half + 1, dtype=jnp.float32)
    theta_p = 1.0 / (10000.0 ** (2.0 * (p - 1.0) / d_h))
    theta = pos[:, None] * theta_p[None, :]                 # (S_pad, half)
    cos_t = jnp.tile(jnp.cos(theta), (1, H))                # (S_pad, E/2)
    sin_t = jnp.tile(jnp.sin(theta), (1, H))

    # ---- additive mask bias (bf16), padded key columns masked ----
    NEG = jnp.float32(-1e30)
    bias = jnp.full((S_pad, S_pad), NEG, jnp.float32)
    bias = bias.at[:S, :S].set(jnp.where(mask == 0, NEG, jnp.float32(0.0)))
    bias = bias.astype(jnp.bfloat16)

    # ---- pad x to S_pad, bf16 inputs for MXU / HBM traffic ----
    x_b = jnp.zeros((B, S_pad, E), jnp.bfloat16).at[:, :S, :].set(x.astype(jnp.bfloat16))

    kernel = partial(mha_kernel, H=H, half=half, tq=tq)
    out = pl.pallas_call(
        kernel,
        out_shape=jax.ShapeDtypeStruct((B, S_pad, E), jnp.float32),
        grid_spec=pltpu.PrefetchScalarGridSpec(
            num_scalar_prefetch=0,
            grid=(B, nq),
            in_specs=[
                pl.BlockSpec((1, S_pad, E), lambda b, q: (b, 0, 0)),   # x (per batch)
                pl.BlockSpec((E, E), lambda b, q: (0, 0)),             # W_Q fused
                pl.BlockSpec((E, E), lambda b, q: (0, 0)),             # W_K fused
                pl.BlockSpec((E, E), lambda b, q: (0, 0)),             # W_V fused
                pl.BlockSpec((E, E), lambda b, q: (0, 0)),             # W_O (row-perm)
                pl.BlockSpec((tq, S_pad), lambda b, q: (q, 0)),        # bias q-tile
                pl.BlockSpec((S_pad, E2), lambda b, q: (0, 0)),        # cos (tiled)
                pl.BlockSpec((S_pad, E2), lambda b, q: (0, 0)),        # sin (tiled)
            ],
            out_specs=pl.BlockSpec((1, tq, E), lambda b, q: (b, q, 0)),
            scratch_shapes=[
                pltpu.VMEM((S_pad, E), jnp.bfloat16),   # RoPE'd Q (per batch)
                pltpu.VMEM((S_pad, E), jnp.bfloat16),   # K
                pltpu.VMEM((S_pad, E), jnp.bfloat16),   # RoPE'd V
                pltpu.VMEM((tq, E), jnp.bfloat16),      # concat of head outputs
            ]),
        compiler_params=pltpu.CompilerParams(
            dimension_semantics=("parallel", "arbitrary"),
            vmem_limit_bytes=48 * 1024 * 1024),
    )(x_b, wq_f, wk_f, wv_f, wo_p, bias, cos_t, sin_t)
    return out[:, :S, :]


# ---------- pure-JAX reference (mirrors the PyTorch module exactly) ----------
def _rope_ref(x):
    B, S, D = x.shape
    pos = jnp.arange(S, dtype=jnp.float32)
    p = jnp.arange(1, D // 2 + 1, dtype=jnp.float32)
    theta_p = 1.0 / (10000.0 ** (2.0 * (p - 1.0) / D))
    theta = pos[:, None] * theta_p[None, :]
    c, s = jnp.cos(theta), jnp.sin(theta)
    x1, x2 = x[..., 0::2], x[..., 1::2]
    r1 = x1 * c - x2 * s
    r2 = x1 * s + x2 * c
    return jnp.stack((r1, r2), axis=-1).reshape(B, S, D)


def _mha_ref(x, w_q, w_k, w_v, w_o, mask):
    H, _, d_h = w_q.shape
    outs = []
    for h in range(H):
        Q, K, V = x @ w_q[h], x @ w_k[h], x @ w_v[h]
        Q, V = _rope_ref(Q), _rope_ref(V)
        scores = Q @ jnp.swapaxes(K, -2, -1) / math.sqrt(d_h)
        scores = jnp.where(mask == 0, -jnp.inf, scores)
        attn = jax.nn.softmax(scores, axis=-1)
        outs.append(attn @ V)
    return jnp.concatenate(outs, axis=-1) @ w_o


if __name__ == "__main__":
    B, S, E, H = 2, 8, 32, 4
    d_h = E // H

    key = jax.random.PRNGKey(0)
    kx, kq, kk, kv, ko = jax.random.split(key, 5)
    x = jax.random.normal(kx, (B, S, E), jnp.float32)
    scale = 1.0 / math.sqrt(E)
    w_q = jax.random.normal(kq, (H, E, d_h), jnp.float32) * scale
    w_k = jax.random.normal(kk, (H, E, d_h), jnp.float32) * scale
    w_v = jax.random.normal(kv, (H, E, d_h), jnp.float32) * scale
    w_o = jax.random.normal(ko, (E, E), jnp.float32) * scale
    mask = jnp.tril(jnp.ones((S, S), jnp.float32))   # causal mask, 0 = masked

    out = multi_head_attention(x, w_q, w_k, w_v, w_o, mask)
    out = jax.block_until_ready(out)

    ref = _mha_ref(x, w_q, w_k, w_v, w_o, mask)
    np.testing.assert_allclose(np.asarray(out), np.asarray(ref),
                               rtol=2e-2, atol=2e-2)
    print("KERNEL_OK")
</pallas_src>

<mosaic_0001>
module attributes {stable_mosaic.version = 11 : i64} {
  func.func @mha_kernel(%arg0: i32, %arg1: i32, %arg2: memref<1x8x32xbf16, #tpu.memory_space<vmem>>, %arg3: memref<32x32xbf16, #tpu.memory_space<vmem>>, %arg4: memref<32x32xbf16, #tpu.memory_space<vmem>>, %arg5: memref<32x32xbf16, #tpu.memory_space<vmem>>, %arg6: memref<32x32xbf16, #tpu.memory_space<vmem>>, %arg7: memref<8x8xbf16, #tpu.memory_space<vmem>>, %arg8: memref<8x16xf32, #tpu.memory_space<vmem>>, %arg9: memref<8x16xf32, #tpu.memory_space<vmem>>, %arg10: memref<1x8x32xf32, #tpu.memory_space<vmem>>, %arg11: memref<8x32xbf16, #tpu.memory_space<vmem>>, %arg12: memref<8x32xbf16, #tpu.memory_space<vmem>>, %arg13: memref<8x32xbf16, #tpu.memory_space<vmem>>, %arg14: memref<8x32xbf16, #tpu.memory_space<vmem>>) attributes {dimension_semantics = [#tpu.dimension_semantics<parallel>, #tpu.dimension_semantics<arbitrary>], iteration_bounds = array<i64: 2, 1>, scalar_prefetch = 0 : i64, scratch_operands = 4 : i64, tpu.core_type = #tpu.core_type<tc>, window_params = [{transform_indices = @transform_0, window_bounds = array<i64: 1, 8, 32>}, {pipeline_mode = #tpu.pipeline_mode<synchronous>, transform_indices = @transform_1, window_bounds = array<i64: 32, 32>}, {pipeline_mode = #tpu.pipeline_mode<synchronous>, transform_indices = @transform_2, window_bounds = array<i64: 32, 32>}, {pipeline_mode = #tpu.pipeline_mode<synchronous>, transform_indices = @transform_3, window_bounds = array<i64: 32, 32>}, {pipeline_mode = #tpu.pipeline_mode<synchronous>, transform_indices = @transform_4, window_bounds = array<i64: 32, 32>}, {transform_indices = @transform_5, window_bounds = array<i64: 8, 8>}, {pipeline_mode = #tpu.pipeline_mode<synchronous>, transform_indices = @transform_6, window_bounds = array<i64: 8, 16>}, {pipeline_mode = #tpu.pipeline_mode<synchronous>, transform_indices = @transform_7, window_bounds = array<i64: 8, 16>}, {transform_indices = @transform_8, window_bounds = array<i64: 1, 8, 32>}]} {
    %c0_i32 = arith.constant 0 : i32
    %0 = arith.cmpi eq, %arg1, %c0_i32 : i32
    %1 = arith.extui %0 : i1 to i32
    %c0_i32_0 = arith.constant 0 : i32
    %2 = arith.cmpi ne, %1, %c0_i32_0 : i32
    scf.if %2 {
      %c0_75 = arith.constant 0 : index
      %c0_76 = arith.constant 0 : index
      %c0_77 = arith.constant 0 : index
      %131 = vector.load %arg2[%c0_75, %c0_76, %c0_77] : memref<1x8x32xbf16, #tpu.memory_space<vmem>>, vector<1x8x32xbf16>
      %132 = vector.shape_cast %131 : vector<1x8x32xbf16> to vector<8x32xbf16>
      %c0_78 = arith.constant 0 : index
      %c0_79 = arith.constant 0 : index
      %133 = vector.load %arg8[%c0_78, %c0_79] : memref<8x16xf32, #tpu.memory_space<vmem>>, vector<8x16xf32>
      %c0_80 = arith.constant 0 : index
      %c0_81 = arith.constant 0 : index
      %134 = vector.load %arg9[%c0_80, %c0_81] : memref<8x16xf32, #tpu.memory_space<vmem>>, vector<8x16xf32>
      %c0_82 = arith.constant 0 : index
      %c0_83 = arith.constant 0 : index
      %135 = vector.load %arg3[%c0_82, %c0_83] : memref<32x32xbf16, #tpu.memory_space<vmem>>, vector<32x32xbf16>
      %cst_84 = arith.constant dense<0.000000e+00> : vector<8x32xf32>
      %136 = tpu.matmul %132, %135, %cst_84 {dimension_numbers = #tpu.dot_dimension_numbers<[1], [0], [0], [1], [0, 0, 1, 1], [], []>} : vector<8x32xbf16>, vector<32x32xbf16>, vector<8x32xf32> -> vector<8x32xf32>
      %c0_85 = arith.constant 0 : index
      %c0_86 = arith.constant 0 : index
      %137 = vector.load %arg4[%c0_85, %c0_86] : memref<32x32xbf16, #tpu.memory_space<vmem>>, vector<32x32xbf16>
      %cst_87 = arith.constant dense<0.000000e+00> : vector<8x32xf32>
      %138 = tpu.matmul %132, %137, %cst_87 {dimension_numbers = #tpu.dot_dimension_numbers<[1], [0], [0], [1], [0, 0, 1, 1], [], []>} : vector<8x32xbf16>, vector<32x32xbf16>, vector<8x32xf32> -> vector<8x32xf32>
      %c0_88 = arith.constant 0 : index
      %c0_89 = arith.constant 0 : index
      %139 = vector.load %arg5[%c0_88, %c0_89] : memref<32x32xbf16, #tpu.memory_space<vmem>>, vector<32x32xbf16>
      %cst_90 = arith.constant dense<0.000000e+00> : vector<8x32xf32>
      %140 = tpu.matmul %132, %139, %cst_90 {dimension_numbers = #tpu.dot_dimension_numbers<[1], [0], [0], [1], [0, 0, 1, 1], [], []>} : vector<8x32xbf16>, vector<32x32xbf16>, vector<8x32xf32> -> vector<8x32xf32>
      %141 = vector.extract_strided_slice %136 {offsets = [0, 0], sizes = [8, 16], strides = [1, 1]} : vector<8x32xf32> to vector<8x16xf32>
      %142 = vector.extract_strided_slice %136 {offsets = [0, 16], sizes = [8, 16], strides = [1, 1]} : vector<8x32xf32> to vector<8x16xf32>
      %143 = vector.extract_strided_slice %140 {offsets = [0, 0], sizes = [8, 16], strides = [1, 1]} : vector<8x32xf32> to vector<8x16xf32>
      %144 = vector.extract_strided_slice %140 {offsets = [0, 16], sizes = [8, 16], strides = [1, 1]} : vector<8x32xf32> to vector<8x16xf32>
      %145 = arith.mulf %141, %133 : vector<8x16xf32>
      %146 = arith.mulf %142, %134 : vector<8x16xf32>
      %147 = arith.subf %145, %146 : vector<8x16xf32>
      %148 = arith.truncf %147 : vector<8x16xf32> to vector<8x16xbf16>
      %c0_91 = arith.constant 0 : index
      %c0_92 = arith.constant 0 : index
      %149 = vector.load %arg11[%c0_91, %c0_92] : memref<8x32xbf16, #tpu.memory_space<vmem>>, vector<8x16xbf16>
      tpu.vector_store %arg11[%c0_91, %c0_92], %148 {strides = array<i32>} : memref<8x32xbf16, #tpu.memory_space<vmem>>, vector<8x16xbf16>,
      %150 = arith.mulf %141, %134 : vector<8x16xf32>
      %151 = arith.mulf %142, %133 : vector<8x16xf32>
      %152 = arith.addf %150, %151 : vector<8x16xf32>
      %153 = arith.truncf %152 : vector<8x16xf32> to vector<8x16xbf16>
      %c0_93 = arith.constant 0 : index
      %c16_94 = arith.constant 16 : index
      %154 = vector.load %arg11[%c0_93, %c16_94] : memref<8x32xbf16, #tpu.memory_space<vmem>>, vector<8x16xbf16>
      tpu.vector_store %arg11[%c0_93, %c16_94], %153 {strides = array<i32>} : memref<8x32xbf16, #tpu.memory_space<vmem>>, vector<8x16xbf16>,
      %155 = arith.mulf %143, %133 : vector<8x16xf32>
      %156 = arith.mulf %144, %134 : vector<8x16xf32>
      %157 = arith.subf %155, %156 : vector<8x16xf32>
      %158 = arith.truncf %157 : vector<8x16xf32> to vector<8x16xbf16>
      %c0_95 = arith.constant 0 : index
      %c0_96 = arith.constant 0 : index
      %159 = vector.load %arg13[%c0_95, %c0_96] : memref<8x32xbf16, #tpu.memory_space<vmem>>, vector<8x16xbf16>
      tpu.vector_store %arg13[%c0_95, %c0_96], %158 {strides = array<i32>} : memref<8x32xbf16, #tpu.memory_space<vmem>>, vector<8x16xbf16>,
      %160 = arith.mulf %143, %134 : vector<8x16xf32>
      %161 = arith.mulf %144, %133 : vector<8x16xf32>
      %162 = arith.addf %160, %161 : vector<8x16xf32>
      %163 = arith.truncf %162 : vector<8x16xf32> to vector<8x16xbf16>
      %c0_97 = arith.constant 0 : index
      %c16_98 = arith.constant 16 : index
      %164 = vector.load %arg13[%c0_97, %c16_98] : memref<8x32xbf16, #tpu.memory_space<vmem>>, vector<8x16xbf16>
      tpu.vector_store %arg13[%c0_97, %c16_98], %163 {strides = array<i32>} : memref<8x32xbf16, #tpu.memory_space<vmem>>, vector<8x16xbf16>,
      %165 = arith.truncf %138 : vector<8x32xf32> to vector<8x32xbf16>
      %c0_99 = arith.constant 0 : index
      %c0_100 = arith.constant 0 : index
      %166 = vector.load %arg12[%c0_99, %c0_100] : memref<8x32xbf16, #tpu.memory_space<vmem>>, vector<8x32xbf16>
      tpu.vector_store %arg12[%c0_99, %c0_100], %165 {strides = array<i32>} : memref<8x32xbf16, #tpu.memory_space<vmem>>, vector<8x32xbf16>,
    } else {
    }
    %c8_i32 = arith.constant 8 : i32
    %3 = arith.muli %arg1, %c8_i32 : i32
    %4 = tpu.assume_multiple %3, 8 : i32
    %5 = arith.index_cast %4 : i32 to index
    %c0 = arith.constant 0 : index
    %6 = vector.load %arg11[%5, %c0] : memref<8x32xbf16, #tpu.memory_space<vmem>>, vector<8x32xbf16>
    %c0_1 = arith.constant 0 : index
    %c0_2 = arith.constant 0 : index
    %7 = vector.load %arg7[%c0_1, %c0_2] : memref<8x8xbf16, #tpu.memory_space<vmem>>, vector<8x8xbf16>
    %8 = arith.extf %7 : vector<8x8xbf16> to vector<8x8xf32>
    %9 = vector.extract_strided_slice %6 {offsets = [0, 0], sizes = [8, 4], strides = [1, 1]} : vector<8x32xbf16> to vector<8x4xbf16>
    %10 = vector.extract_strided_slice %6 {offsets = [0, 16], sizes = [8, 4], strides = [1, 1]} : vector<8x32xbf16> to vector<8x4xbf16>
    %c0_3 = arith.constant 0 : index
    %c0_4 = arith.constant 0 : index
    %11 = vector.load %arg12[%c0_3, %c0_4] : memref<8x32xbf16, #tpu.memory_space<vmem>>, vector<8x4xbf16>
    %c0_5 = arith.constant 0 : index
    %c16 = arith.constant 16 : index
    %12 = vector.load %arg12[%c0_5, %c16] : memref<8x32xbf16, #tpu.memory_space<vmem>>, vector<8x4xbf16>
    %cst = arith.constant dense<0.000000e+00> : vector<8x8xf32>
    %13 = tpu.matmul %9, %11, %cst {dimension_numbers = #tpu.dot_dimension_numbers<[1], [1], [0], [0], [0, 0, 1, 0], [], []>} : vector<8x4xbf16>, vector<8x4xbf16>, vector<8x8xf32> -> vector<8x8xf32>
    %cst_6 = arith.constant dense<0.000000e+00> : vector<8x8xf32>
    %14 = tpu.matmul %10, %12, %cst_6 {dimension_numbers = #tpu.dot_dimension_numbers<[1], [1], [0], [0], [0, 0, 1, 0], [], []>} : vector<8x4xbf16>, vector<8x4xbf16>, vector<8x8xf32> -> vector<8x8xf32>
    %15 = arith.addf %13, %14 : vector<8x8xf32>
    %16 = arith.addf %15, %8 : vector<8x8xf32>
    %cst_7 = arith.constant dense<0xFF800000> : vector<8xf32>
    %17 = vector.multi_reduction <maximumf>, %16, %cst_7 [1] : vector<8x8xf32> to vector<8xf32>
    %18 = vector.shape_cast %17 : vector<8xf32> to vector<8x1xf32>
    %19 = vector.broadcast %18 : vector<8x1xf32> to vector<8x8xf32>
    %20 = arith.subf %16, %19 : vector<8x8xf32>
    %21 = math.exp %20 : vector<8x8xf32>
    %cst_8 = arith.constant dense<0.000000e+00> : vector<8xf32>
    %22 = vector.multi_reduction <add>, %21, %cst_8 [1] : vector<8x8xf32> to vector<8xf32>
    %23 = vector.shape_cast %22 : vector<8xf32> to vector<8x1xf32>
    %24 = tpu.reciprocal %23 {approx = true} : vector<8x1xf32> -> vector<8x1xf32>
    %25 = arith.truncf %21 : vector<8x8xf32> to vector<8x8xbf16>
    %c0_9 = arith.constant 0 : index
    %c0_10 = arith.constant 0 : index
    %26 = vector.load %arg13[%c0_9, %c0_10] : memref<8x32xbf16, #tpu.memory_space<vmem>>, vector<8x4xbf16>
    %cst_11 = arith.constant dense<0.000000e+00> : vector<8x4xf32>
    %27 = tpu.matmul %25, %26, %cst_11 {dimension_numbers = #tpu.dot_dimension_numbers<[1], [0], [0], [1], [0, 0, 1, 1], [], []>} : vector<8x8xbf16>, vector<8x4xbf16>, vector<8x4xf32> -> vector<8x4xf32>
    %c0_12 = arith.constant 0 : index
    %c16_13 = arith.constant 16 : index
    %28 = vector.load %arg13[%c0_12, %c16_13] : memref<8x32xbf16, #tpu.memory_space<vmem>>, vector<8x4xbf16>
    %cst_14 = arith.constant dense<0.000000e+00> : vector<8x4xf32>
    %29 = tpu.matmul %25, %28, %cst_14 {dimension_numbers = #tpu.dot_dimension_numbers<[1], [0], [0], [1], [0, 0, 1, 1], [], []>} : vector<8x8xbf16>, vector<8x4xbf16>, vector<8x4xf32> -> vector<8x4xf32>
    %30 = vector.broadcast %24 : vector<8x1xf32> to vector<8x4xf32>
    %31 = arith.mulf %27, %30 : vector<8x4xf32>
    %32 = arith.truncf %31 : vector<8x4xf32> to vector<8x4xbf16>
    %c0_15 = arith.constant 0 : index
    %c0_16 = arith.constant 0 : index
    %33 = vector.load %arg14[%c0_15, %c0_16] : memref<8x32xbf16, #tpu.memory_space<vmem>>, vector<8x4xbf16>
    tpu.vector_store %arg14[%c0_15, %c0_16], %32 {strides = array<i32>} : memref<8x32xbf16, #tpu.memory_space<vmem>>, vector<8x4xbf16>,
    %34 = vector.broadcast %24 : vector<8x1xf32> to vector<8x4xf32>
    %35 = arith.mulf %29, %34 : vector<8x4xf32>
    %36 = arith.truncf %35 : vector<8x4xf32> to vector<8x4xbf16>
    %c0_17 = arith.constant 0 : index
    %c16_18 = arith.constant 16 : index
    %37 = vector.load %arg14[%c0_17, %c16_18] : memref<8x32xbf16, #tpu.memory_space<vmem>>, vector<8x4xbf16>
    tpu.vector_store %arg14[%c0_17, %c16_18], %36 {strides = array<i32>} : memref<8x32xbf16, #tpu.memory_space<vmem>>, vector<8x4xbf16>,
    %38 = vector.extract_strided_slice %6 {offsets = [0, 4], sizes = [8, 4], strides = [1, 1]} : vector<8x32xbf16> to vector<8x4xbf16>
    %39 = vector.extract_strided_slice %6 {offsets = [0, 20], sizes = [8, 4], strides = [1, 1]} : vector<8x32xbf16> to vector<8x4xbf16>
    %c0_19 = arith.constant 0 : index
    %c4 = arith.constant 4 : index
    %40 = vector.load %arg12[%c0_19, %c4] : memref<8x32xbf16, #tpu.memory_space<vmem>>, vector<8x4xbf16>
    %c0_20 = arith.constant 0 : index
    %c20 = arith.constant 20 : index
    %41 = vector.load %arg12[%c0_20, %c20] : memref<8x32xbf16, #tpu.memory_space<vmem>>, vector<8x4xbf16>
    %cst_21 = arith.constant dense<0.000000e+00> : vector<8x8xf32>
    %42 = tpu.matmul %38, %40, %cst_21 {dimension_numbers = #tpu.dot_dimension_numbers<[1], [1], [0], [0], [0, 0, 1, 0], [], []>} : vector<8x4xbf16>, vector<8x4xbf16>, vector<8x8xf32> -> vector<8x8xf32>
    %cst_22 = arith.constant dense<0.000000e+00> : vector<8x8xf32>
    %43 = tpu.matmul %39, %41, %cst_22 {dimension_numbers = #tpu.dot_dimension_numbers<[1], [1], [0], [0], [0, 0, 1, 0], [], []>} : vector<8x4xbf16>, vector<8x4xbf16>, vector<8x8xf32> -> vector<8x8xf32>
    %44 = arith.addf %42, %43 : vector<8x8xf32>
    %45 = arith.addf %44, %8 : vector<8x8xf32>
    %cst_23 = arith.constant dense<0xFF800000> : vector<8xf32>
    %46 = vector.multi_reduction <maximumf>, %45, %cst_23 [1] : vector<8x8xf32> to vector<8xf32>
    %47 = vector.shape_cast %46 : vector<8xf32> to vector<8x1xf32>
    %48 = vector.broadcast %47 : vector<8x1xf32> to vector<8x8xf32>
    %49 = arith.subf %45, %48 : vector<8x8xf32>
    %50 = math.exp %49 : vector<8x8xf32>
    %cst_24 = arith.constant dense<0.000000e+00> : vector<8xf32>
    %51 = vector.multi_reduction <add>, %50, %cst_24 [1] : vector<8x8xf32> to vector<8xf32>
    %52 = vector.shape_cast %51 : vector<8xf32> to vector<8x1xf32>
    %53 = tpu.reciprocal %52 {approx = true} : vector<8x1xf32> -> vector<8x1xf32>
    %54 = arith.truncf %50 : vector<8x8xf32> to vector<8x8xbf16>
    %c0_25 = arith.constant 0 : index
    %c4_26 = arith.constant 4 : index
    %55 = vector.load %arg13[%c0_25, %c4_26] : memref<8x32xbf16, #tpu.memory_space<vmem>>, vector<8x4xbf16>
    %cst_27 = arith.constant dense<0.000000e+00> : vector<8x4xf32>
    %56 = tpu.matmul %54, %55, %cst_27 {dimension_numbers = #tpu.dot_dimension_numbers<[1], [0], [0], [1], [0, 0, 1, 1], [], []>} : vector<8x8xbf16>, vector<8x4xbf16>, vector<8x4xf32> -> vector<8x4xf32>
    %c0_28 = arith.constant 0 : index
    %c20_29 = arith.constant 20 : index
    %57 = vector.load %arg13[%c0_28, %c20_29] : memref<8x32xbf16, #tpu.memory_space<vmem>>, vector<8x4xbf16>
    %cst_30 = arith.constant dense<0.000000e+00> : vector<8x4xf32>
    %58 = tpu.matmul %54, %57, %cst_30 {dimension_numbers = #tpu.dot_dimension_numbers<[1], [0], [0], [1], [0, 0, 1, 1], [], []>} : vector<8x8xbf16>, vector<8x4xbf16>, vector<8x4xf32> -> vector<8x4xf32>
    %59 = vector.broadcast %53 : vector<8x1xf32> to vector<8x4xf32>
    %60 = arith.mulf %56, %59 : vector<8x4xf32>
    %61 = arith.truncf %60 : vector<8x4xf32> to vector<8x4xbf16>
    %c0_31 = arith.constant 0 : index
    %c4_32 = arith.constant 4 : index
    %62 = vector.load %arg14[%c0_31, %c4_32] : memref<8x32xbf16, #tpu.memory_space<vmem>>, vector<8x4xbf16>
    tpu.vector_store %arg14[%c0_31, %c4_32], %61 {strides = array<i32>} : memref<8x32xbf16, #tpu.memory_space<vmem>>, vector<8x4xbf16>,
    %63 = vector.broadcast %53 : vector<8x1xf32> to vector<8x4xf32>
    %64 = arith.mulf %58, %63 : vector<8x4xf32>
    %65 = arith.truncf %64 : vector<8x4xf32> to vector<8x4xbf16>
    %c0_33 = arith.constant 0 : index
    %c20_34 = arith.constant 20 : index
    %66 = vector.load %arg14[%c0_33, %c20_34] : memref<8x32xbf16, #tpu.memory_space<vmem>>, vector<8x4xbf16>
    tpu.vector_store %arg14[%c0_33, %c20_34], %65 {strides = array<i32>} : memref<8x32xbf16, #tpu.memory_space<vmem>>, vector<8x4xbf16>,
    %67 = vector.extract_strided_slice %6 {offsets = [0, 8], sizes = [8, 4], strides = [1, 1]} : vector<8x32xbf16> to vector<8x4xbf16>
    %68 = vector.extract_strided_slice %6 {offsets = [0, 24], sizes = [8, 4], strides = [1, 1]} : vector<8x32xbf16> to vector<8x4xbf16>
    %c0_35 = arith.constant 0 : index
    %c8 = arith.constant 8 : index
    %69 = vector.load %arg12[%c0_35, %c8] : memref<8x32xbf16, #tpu.memory_space<vmem>>, vector<8x4xbf16>
    %c0_36 = arith.constant 0 : index
    %c24 = arith.constant 24 : index
    %70 = vector.load %arg12[%c0_36, %c24] : memref<8x32xbf16, #tpu.memory_space<vmem>>, vector<8x4xbf16>
    %cst_37 = arith.constant dense<0.000000e+00> : vector<8x8xf32>
    %71 = tpu.matmul %67, %69, %cst_37 {dimension_numbers = #tpu.dot_dimension_numbers<[1], [1], [0], [0], [0, 0, 1, 0], [], []>} : vector<8x4xbf16>, vector<8x4xbf16>, vector<8x8xf32> -> vector<8x8xf32>
    %cst_38 = arith.constant dense<0.000000e+00> : vector<8x8xf32>
    %72 = tpu.matmul %68, %70, %cst_38 {dimension_numbers = #tpu.dot_dimension_numbers<[1], [1], [0], [0], [0, 0, 1, 0], [], []>} : vector<8x4xbf16>, vector<8x4xbf16>, vector<8x8xf32> -> vector<8x8xf32>
    %73 = arith.addf %71, %72 : vector<8x8xf32>
    %74 = arith.addf %73, %8 : vector<8x8xf32>
    %cst_39 = arith.constant dense<0xFF800000> : vector<8xf32>
    %75 = vector.multi_reduction <maximumf>, %74, %cst_39 [1] : vector<8x8xf32> to vector<8xf32>
    %76 = vector.shape_cast %75 : vector<8xf32> to vector<8x1xf32>
    %77 = vector.broadcast %76 : vector<8x1xf32> to vector<8x8xf32>
    %78 = arith.subf %74, %77 : vector<8x8xf32>
    %79 = math.exp %78 : vector<8x8xf32>
    %cst_40 = arith.constant dense<0.000000e+00> : vector<8xf32>
    %80 = vector.multi_reduction <add>, %79, %cst_40 [1] : vector<8x8xf32> to vector<8xf32>
    %81 = vector.shape_cast %80 : vector<8xf32> to vector<8x1xf32>
    %82 = tpu.reciprocal %81 {approx = true} : vector<8x1xf32> -> vector<8x1xf32>
    %83 = arith.truncf %79 : vector<8x8xf32> to vector<8x8xbf16>
    %c0_41 = arith.constant 0 : index
    %c8_42 = arith.constant 8 : index
    %84 = vector.load %arg13[%c0_41, %c8_42] : memref<8x32xbf16, #tpu.memory_space<vmem>>, vector<8x4xbf16>
    %cst_43 = arith.constant dense<0.000000e+00> : vector<8x4xf32>
    %85 = tpu.matmul %83, %84, %cst_43 {dimension_numbers = #tpu.dot_dimension_numbers<[1], [0], [0], [1], [0, 0, 1, 1], [], []>} : vector<8x8xbf16>, vector<8x4xbf16>, vector<8x4xf32> -> vector<8x4xf32>
    %c0_44 = arith.constant 0 : index
    %c24_45 = arith.constant 24 : index
    %86 = vector.load %arg13[%c0_44, %c24_45] : memref<8x32xbf16, #tpu.memory_space<vmem>>, vector<8x4xbf16>
    %cst_46 = arith.constant dense<0.000000e+00> : vector<8x4xf32>
    %87 = tpu.matmul %83, %86, %cst_46 {dimension_numbers = #tpu.dot_dimension_numbers<[1], [0], [0], [1], [0, 0, 1, 1], [], []>} : vector<8x8xbf16>, vector<8x4xbf16>, vector<8x4xf32> -> vector<8x4xf32>
    %88 = vector.broadcast %82 : vector<8x1xf32> to vector<8x4xf32>
    %89 = arith.mulf %85, %88 : vector<8x4xf32>
    %90 = arith.truncf %89 : vector<8x4xf32> to vector<8x4xbf16>
    %c0_47 = arith.constant 0 : index
    %c8_48 = arith.constant 8 : index
    %91 = vector.load %arg14[%c0_47, %c8_48] : memref<8x32xbf16, #tpu.memory_space<vmem>>, vector<8x4xbf16>
    tpu.vector_store %arg14[%c0_47, %c8_48], %90 {strides = array<i32>} : memref<8x32xbf16, #tpu.memory_space<vmem>>, vector<8x4xbf16>,
    %92 = vector.broadcast %82 : vector<8x1xf32> to vector<8x4xf32>
    %93 = arith.mulf %87, %92 : vector<8x4xf32>
    %94 = arith.truncf %93 : vector<8x4xf32> to vector<8x4xbf16>
    %c0_49 = arith.constant 0 : index
    %c24_50 = arith.constant 24 : index
    %95 = vector.load %arg14[%c0_49, %c24_50] : memref<8x32xbf16, #tpu.memory_space<vmem>>, vector<8x4xbf16>
    tpu.vector_store %arg14[%c0_49, %c24_50], %94 {strides = array<i32>} : memref<8x32xbf16, #tpu.memory_space<vmem>>, vector<8x4xbf16>,
    %96 = vector.extract_strided_slice %6 {offsets = [0, 12], sizes = [8, 4], strides = [1, 1]} : vector<8x32xbf16> to vector<8x4xbf16>
    %97 = vector.extract_strided_slice %6 {offsets = [0, 28], sizes = [8, 4], strides = [1, 1]} : vector<8x32xbf16> to vector<8x4xbf16>
    %c0_51 = arith.constant 0 : index
    %c12 = arith.constant 12 : index
    %98 = vector.load %arg12[%c0_51, %c12] : memref<8x32xbf16, #tpu.memory_space<vmem>>, vector<8x4xbf16>
    %c0_52 = arith.constant 0 : index
    %c28 = arith.constant 28 : index
    %99 = vector.load %arg12[%c0_52, %c28] : memref<8x32xbf16, #tpu.memory_space<vmem>>, vector<8x4xbf16>
    %cst_53 = arith.constant dense<0.000000e+00> : vector<8x8xf32>
    %100 = tpu.matmul %96, %98, %cst_53 {dimension_numbers = #tpu.dot_dimension_numbers<[1], [1], [0], [0], [0, 0, 1, 0], [], []>} : vector<8x4xbf16>, vector<8x4xbf16>, vector<8x8xf32> -> vector<8x8xf32>
    %cst_54 = arith.constant dense<0.000000e+00> : vector<8x8xf32>
    %101 = tpu.matmul %97, %99, %cst_54 {dimension_numbers = #tpu.dot_dimension_numbers<[1], [1], [0], [0], [0, 0, 1, 0], [], []>} : vector<8x4xbf16>, vector<8x4xbf16>, vector<8x8xf32> -> vector<8x8xf32>
    %102 = arith.addf %100, %101 : vector<8x8xf32>
    %103 = arith.addf %102, %8 : vector<8x8xf32>
    %cst_55 = arith.constant dense<0xFF800000> : vector<8xf32>
    %104 = vector.multi_reduction <maximumf>, %103, %cst_55 [1] : vector<8x8xf32> to vector<8xf32>
    %105 = vector.shape_cast %104 : vector<8xf32> to vector<8x1xf32>
    %106 = vector.broadcast %105 : vector<8x1xf32> to vector<8x8xf32>
    %107 = arith.subf %103, %106 : vector<8x8xf32>
    %108 = math.exp %107 : vector<8x8xf32>
    %cst_56 = arith.constant dense<0.000000e+00> : vector<8xf32>
    %109 = vector.multi_reduction <add>, %108, %cst_56 [1] : vector<8x8xf32> to vector<8xf32>
    %110 = vector.shape_cast %109 : vector<8xf32> to vector<8x1xf32>
    %111 = tpu.reciprocal %110 {approx = true} : vector<8x1xf32> -> vector<8x1xf32>
    %112 = arith.truncf %108 : vector<8x8xf32> to vector<8x8xbf16>
    %c0_57 = arith.constant 0 : index
    %c12_58 = arith.constant 12 : index
    %113 = vector.load %arg13[%c0_57, %c12_58] : memref<8x32xbf16, #tpu.memory_space<vmem>>, vector<8x4xbf16>
    %cst_59 = arith.constant dense<0.000000e+00> : vector<8x4xf32>
    %114 = tpu.matmul %112, %113, %cst_59 {dimension_numbers = #tpu.dot_dimension_numbers<[1], [0], [0], [1], [0, 0, 1, 1], [], []>} : vector<8x8xbf16>, vector<8x4xbf16>, vector<8x4xf32> -> vector<8x4xf32>
    %c0_60 = arith.constant 0 : index
    %c28_61 = arith.constant 28 : index
    %115 = vector.load %arg13[%c0_60, %c28_61] : memref<8x32xbf16, #tpu.memory_space<vmem>>, vector<8x4xbf16>
    %cst_62 = arith.constant dense<0.000000e+00> : vector<8x4xf32>
    %116 = tpu.matmul %112, %115, %cst_62 {dimension_numbers = #tpu.dot_dimension_numbers<[1], [0], [0], [1], [0, 0, 1, 1], [], []>} : vector<8x8xbf16>, vector<8x4xbf16>, vector<8x4xf32> -> vector<8x4xf32>
    %117 = vector.broadcast %111 : vector<8x1xf32> to vector<8x4xf32>
    %118 = arith.mulf %114, %117 : vector<8x4xf32>
    %119 = arith.truncf %118 : vector<8x4xf32> to vector<8x4xbf16>
    %c0_63 = arith.constant 0 : index
    %c12_64 = arith.constant 12 : index
    %120 = vector.load %arg14[%c0_63, %c12_64] : memref<8x32xbf16, #tpu.memory_space<vmem>>, vector<8x4xbf16>
    tpu.vector_store %arg14[%c0_63, %c12_64], %119 {strides = array<i32>} : memref<8x32xbf16, #tpu.memory_space<vmem>>, vector<8x4xbf16>,
    %121 = vector.broadcast %111 : vector<8x1xf32> to vector<8x4xf32>
    %122 = arith.mulf %116, %121 : vector<8x4xf32>
    %123 = arith.truncf %122 : vector<8x4xf32> to vector<8x4xbf16>
    %c0_65 = arith.constant 0 : index
    %c28_66 = arith.constant 28 : index
    %124 = vector.load %arg14[%c0_65, %c28_66] : memref<8x32xbf16, #tpu.memory_space<vmem>>, vector<8x4xbf16>
    tpu.vector_store %arg14[%c0_65, %c28_66], %123 {strides = array<i32>} : memref<8x32xbf16, #tpu.memory_space<vmem>>, vector<8x4xbf16>,
    %c0_67 = arith.constant 0 : index
    %c0_68 = arith.constant 0 : index
    %125 = vector.load %arg14[%c0_67, %c0_68] : memref<8x32xbf16, #tpu.memory_space<vmem>>, vector<8x32xbf16>
    %c0_69 = arith.constant 0 : index
    %c0_70 = arith.constant 0 : index
    %126 = vector.load %arg6[%c0_69, %c0_70] : memref<32x32xbf16, #tpu.memory_space<vmem>>, vector<32x32xbf16>
    %cst_71 = arith.constant dense<0.000000e+00> : vector<8x32xf32>
    %127 = tpu.matmul %125, %126, %cst_71 {dimension_numbers = #tpu.dot_dimension_numbers<[1], [0], [0], [1], [0, 0, 1, 1], [], []>} : vector<8x32xbf16>, vector<32x32xbf16>, vector<8x32xf32> -> vector<8x32xf32>
    %c0_72 = arith.constant 0 : index
    %c0_73 = arith.constant 0 : index
    %c0_74 = arith.constant 0 : index
    %128 = vector.load %arg10[%c0_72, %c0_73, %c0_74] : memref<1x8x32xf32, #tpu.memory_space<vmem>>, vector<1x8x32xf32>
    %129 = vector.shape_cast %128 : vector<1x8x32xf32> to vector<8x32xf32>
    %130 = vector.shape_cast %127 : vector<8x32xf32> to vector<1x8x32xf32>
    tpu.vector_store %arg10[%c0_72, %c0_73, %c0_74], %130 {strides = array<i32>} : memref<1x8x32xf32, #tpu.memory_space<vmem>>, vector<1x8x32xf32>,
    return
  }
  func.func @transform_0(%arg0: i32, %arg1: i32) -> (i32, i32, i32) {
    %c0_i32 = arith.constant 0 : i32
    %c0_i32_0 = arith.constant 0 : i32
    %c0_i32_1 = arith.constant 0 : i32
    return %arg0, %c0_i32, %c0_i32_0 : i32, i32, i32
  }
  func.func @transform_1(%arg0: i32, %arg1: i32) -> (i32, i32) {
    %c0_i32 = arith.constant 0 : i32
    %c0_i32_0 = arith.constant 0 : i32
    %c0_i32_1 = arith.constant 0 : i32
    return %c0_i32, %c0_i32_0 : i32, i32
  }
  func.func @transform_2(%arg0: i32, %arg1: i32) -> (i32, i32) {
    %c0_i32 = arith.constant 0 : i32
    %c0_i32_0 = arith.constant 0 : i32
    %c0_i32_1 = arith.constant 0 : i32
    return %c0_i32, %c0_i32_0 : i32, i32
  }
  func.func @transform_3(%arg0: i32, %arg1: i32) -> (i32, i32) {
    %c0_i32 = arith.constant 0 : i32
    %c0_i32_0 = arith.constant 0 : i32
    %c0_i32_1 = arith.constant 0 : i32
    return %c0_i32, %c0_i32_0 : i32, i32
  }
  func.func @transform_4(%arg0: i32, %arg1: i32) -> (i32, i32) {
    %c0_i32 = arith.constant 0 : i32
    %c0_i32_0 = arith.constant 0 : i32
    %c0_i32_1 = arith.constant 0 : i32
    return %c0_i32, %c0_i32_0 : i32, i32
  }
  func.func @transform_5(%arg0: i32, %arg1: i32) -> (i32, i32) {
    %c0_i32 = arith.constant 0 : i32
    %c0_i32_0 = arith.constant 0 : i32
    return %arg1, %c0_i32 : i32, i32
  }
  func.func @transform_6(%arg0: i32, %arg1: i32) -> (i32, i32) {
    %c0_i32 = arith.constant 0 : i32
    %c0_i32_0 = arith.constant 0 : i32
    %c0_i32_1 = arith.constant 0 : i32
    return %c0_i32, %c0_i32_0 : i32, i32
  }
  func.func @transform_7(%arg0: i32, %arg1: i32) -> (i32, i32) {
    %c0_i32 = arith.constant 0 : i32
    %c0_i32_0 = arith.constant 0 : i32
    %c0_i32_1 = arith.constant 0 : i32
    return %c0_i32, %c0_i32_0 : i32, i32
  }
  func.func @transform_8(%arg0: i32, %arg1: i32) -> (i32, i32, i32) {
    %c0_i32 = arith.constant 0 : i32
    %c0_i32_0 = arith.constant 0 : i32
    return %arg0, %arg1, %c0_i32 : i32, i32, i32
  }
}

</mosaic_0001>

<bundles_post_ra>
// kernel: tpu_custom_call.1
= control target key start
LH: loop header
LB: loop body
LE: loop exit
PB: predicated region body
PF: predicated region fallthrough
CT: control target
= control target key end

     0   :  { %s2195_s0 = inlined_call_operand.hbm [shape: bf16[2,8,32], index: 0, kind: input, shape index: {}]   ;;  %s2196_s1 = inlined_call_operand.hbm [shape: bf16[32,32], index: 1, kind: input, shape index: {}]   ;;  %s2197_s2 = inlined_call_operand.hbm [shape: bf16[32,32], index: 2, kind: input, shape index: {}]   ;;  %s2198_s3 = inlined_call_operand.hbm [shape: bf16[32,32], index: 3, kind: input, shape index: {}]   ;;  %s2199_s4 = inlined_call_operand.hbm [shape: bf16[32,32], index: 4, kind: input, shape index: {}]   ;;  %s2200_s5 = inlined_call_operand.vmem [shape: bf16[8,8], index: 5, kind: input, shape index: {}]   ;;  %s2201_s6 = inlined_call_operand.hbm [shape: f32[8,16], index: 6, kind: input, shape index: {}]   ;;  %s2202_s7 = inlined_call_operand.hbm [shape: f32[8,16], index: 7, kind: input, shape index: {}]   ;;  %s2203_s8 = inlined_call_operand.hbm [shape: f32[2,8,32], index: 8, kind: output, shape index: {}]  }
   0x1   :  { %2205 = sst [smem:[#allocation24_spill]] %s2196_s1 }
   0x2   :  { %2206 = sst [smem:[#allocation25_spill]] %s2197_s2 }
   0x3   :  { %2207 = sst [smem:[#allocation26_spill]] %s2198_s3 }
   0x4   :  { %13 = vsyncpa [#allocation7], 0 }
   0x5   :  { %15 = vsyncpa [#allocation7 + $0x1], 0 }
   0x6   :  { %16 = vsyncpa [#allocation10], 0 }
   0x7   :  { %17 = vsyncpa [#allocation13], 0 }
   0x8   :  { %18 = vsyncpa [#allocation16], 0 }
   0x9   :  { %19 = vsyncpa [#allocation8], 0 }
   0xa   :  { %21 = vsyncpa [#allocation8 + $0x1], 0  ;;  %s1912_s27 = smov 0   ;;  %s1914_s28 = smov 0  }
   0xb   :  { %s1916_s29 = smov 0   ;;  %s1918_s30 = smov 0  }
   0xc   :  { %s1920_s9 = smov 0   ;;  %s1922_s10 = smov 0  }
   0xd LB: > { %s2204_s11 = sadd.s32 4294967295, %s1843_s10   ;;  %p1300_p0 = scmp.ge.s32.totalorder %s1843_s10, 1  ;;  %s1843_s10 = sphi %s1922_s10, %s27_s10   ;;  %s1839_s9 = sphi %s1920_s9, %s2222_s9   ;;  %s1835_s30 = sphi %s1918_s30, %s2221_s30   ;;  %s1831_s29 = sphi %s1916_s29, %s2220_s29   ;;  %s1827_s28 = sphi %s1914_s28, %s2219_s28   ;;  %s1823_s27 = sphi %s1912_s27, %s2218_s27  }
   0xe   : > { %p1946_p1 = scmp.eq.s32.totalorder %s2204_s11, 0  ;;  %p250_p2 = scmp.lt.s32.totalorder %s1843_s10, 3 }
   0xf   : > { %s2209_s1 = sld [smem:[#allocation24_spill]]  ;;  %s1845_s17 = smov [#allocation9]  }
  0x10   : > { %p1954_p3 = pnand %p1300_p0, %p250_p2  ;;  %s263_s18 = sshll.u32 %s1845_s17, 4  ;;  %s264_s18 = int_to_ptr.vmem [resolvable:$true] %s263_s18 }
  0x11   : > { %p1308_p6 = scmp.ge.s32.totalorder %s1843_s10, 2  ;;  %s2212_s3 = sld [smem:[#allocation26_spill]] }
  0x12   : > { %p1412_p4 = pneg %p1954_p3  ;;  %s1846_s23 = smov 64  }
  0x13   : > { %s1847_s24 = smov 4   ;;  %s1848_s25 = smov [#allocation12]  }
  0x14   : > { %p1962_p5 = pnand %p1412_p4, %p1946_p1  ;;  %s291_s26 = sshll.u32 %s1848_s25, 4  ;;  %s292_s26 = int_to_ptr.vmem [resolvable:$true] %s291_s26 }
  0x15   : > { %s261_s15 = sshll.u32 %s2209_s1, 4  ;;  %s325_s17 = sshll.u32 %s2201_s6, 4  ;;  %s262_s15 = int_to_ptr.hbm [resolvable:$true] %s261_s15  ;;  %s326_s17 = int_to_ptr.hbm [resolvable:$true] %s325_s17 }
  0x16   : > { %1415 = dma.hbm_to_vmem [thread:$0]  (!%p1962_p5), %s262_s15, 256, %s264_s18, [#allocation10], %s1846_s23, %s1846_s23, %s1847_s24  }
  0x17   : > { %s289_s22 = sshll.u32 %s2212_s3, 4  ;;  %s2213_s2 = sld [smem:[#allocation25_spill]]  ;;  %s290_s22 = int_to_ptr.hbm [resolvable:$true] %s289_s22 }
  0x18   : > { %1421 = dma.hbm_to_vmem [thread:$0]  (!%p1962_p5), %s290_s22, 256, %s292_s26, [#allocation13], %s1846_s23, %s1846_s23, %s1847_s24  }
  0x19   : > { %s1849_s1 = smov [#allocation15]   ;;  %s1850_s15 = smov [#allocation11]  }
  0x1a   : > { %s327_s3 = sshll.u32 %s1849_s1, 4  ;;  %s277_s18 = sshll.u32 %s1850_s15, 4  ;;  %s328_s3 = int_to_ptr.vmem [resolvable:$true] %s327_s3  ;;  %s278_s18 = int_to_ptr.vmem [resolvable:$true] %s277_s18 }
  0x1b   : > { %1427 = dma.hbm_to_vmem [thread:$0]  (!%p1962_p5), %s326_s17, 128, %s328_s3, [#allocation16]  }
  0x1c   : > { %s303_s22 = sshll.u32 %s2199_s4, 4  ;;  %s337_s3 = sshll.u32 %s2202_s7, 4  ;;  %s304_s22 = int_to_ptr.hbm [resolvable:$true] %s303_s22  ;;  %s338_s3 = int_to_ptr.hbm [resolvable:$true] %s337_s3 }
  0x1d   : > { %s275_s21 = sshll.u32 %s2213_s2, 4  ;;  %s1851_s26 = smov [#allocation14]   ;;  %s276_s21 = int_to_ptr.hbm [resolvable:$true] %s275_s21 }
  0x1e   : > { %1418 = dma.hbm_to_vmem [thread:$0]  (!%p1962_p5), %s276_s21, 256, %s278_s18, [#allocation10], %s1846_s23, %s1846_s23, %s1847_s24  }
  0x1f   : > { %s305_s14 = sshll.u32 %s1851_s26, 4  ;;  %s1852_s17 = smov [#allocation17]   ;;  %s306_s14 = int_to_ptr.vmem [resolvable:$true] %s305_s14 }
  0x20   : > { %1424 = dma.hbm_to_vmem [thread:$0]  (!%p1962_p5), %s304_s22, 256, %s306_s14, [#allocation13], %s1846_s23, %s1846_s23, %s1847_s24  }
  0x21   : > { %s339_s20 = sshll.u32 %s1852_s17, 4  ;;  %s39_s21 = sadd.s32 1, %s1839_s9  ;;  %s340_s20 = int_to_ptr.vmem [resolvable:$true] %s339_s20 }
  0x22   : > { %1430 = dma.hbm_to_vmem [thread:$0]  (!%p1962_p5), %s338_s3, 128, %s340_s20, [#allocation16]  }
  0x23   : > { %s1299_s15 = sadd.s32 4294967294, %s1843_s10   ;;  %p41_p7 = scmp.ge.s32.totalorder %s39_s21, 2 }
  0x24   : > { %s46_s18 = sadd.s32 1, %s1831_s29  ;;  %p53_p8 = scmp.ne.s32.totalorder %s1831_s29, %s1827_s28 }
  0x25   : > { %s2224_s21 = smov (%p41_p7, %s39_s21), 0  ;;  %p54_p9 = scmp.eq.s32.totalorder %s1843_s10, 0 }
  0x26   : > { %p59_p10 = scmp.ne.s32.totalorder %s1827_s28, %s1823_s27  ;;  %s43_s23 = ssub.s32 %s1839_s9, %s2224_s21 }
  0x27   : > { %s2214_s24 = sadd.s32 4294967295, %s1843_s10   ;;  %p44_p12 = scmp.eq.s32.totalorder %s43_s23, 0 }
  0x28   : > { %p237_p11 = scmp.eq.s32.totalorder %s2214_s24, 1  ;;  %p2010_p13 = por %p1946_p1, %p59_p10 }
  0x29   : > { %p243_p2 = scmp.eq.s32.totalorder %s1299_s15, 1  ;;  %p55_p4 = por %p54_p9, %p53_p8 }
  0x2a   : > { %p2014_p0 = por %p237_p11, %p53_p8  ;;  %s350_s1 = sand.u32 1, %s1831_s29  }
  0x2b   : > { %s2019_s13 = scalar_select %p44_p12, %s1831_s29, %s46_s18  }
  0x2c   : > { %p2021_p5 = por %p243_p2, %p59_p10  ;;  %s1310_s11 = sshll.u32 %s1839_s9, 2 }
  0x2d   : > { %p1445_p7 = scmp.lt.s32.totalorder %s1843_s10, 2  ;;  %s1309_s3 = sshll.u32 %s350_s1, 2 }
  0x2e   : > { %s358_s17 = scalar_lea.hbm %s2195_s0, %s1310_s11  ;;  %s354_s23 = scalar_lea.vmem [#allocation6], %s1309_s3 }
  0x2f   : > { %s360_s20 = sshll.u32 %s358_s17, 4  ;;  %s362_s24 = sshll.u32 %s354_s23, 4  ;;  %s361_s20 = int_to_ptr.hbm [resolvable:$true] %s360_s20  ;;  %s363_s24 = int_to_ptr.vmem [resolvable:$true] %s362_s24 }
  0x30   : > { %p1432_p11 = pnand %p1445_p7, %p55_p4  ;;  %s351_s15 = scalar_lea.sflag [#allocation7], %s350_s1 }
  0x31   : > { %371 = sbr.rel (%p1954_p3) target bundleno = 1271 (0x4f7), region = 52  ;;  %s2034_s18 = sand.u32 (!%p1954_p3), 1, %s1827_s28  }
  0x32   : > { %1434 = dma.hbm_to_vmem [thread:$0]  (!%p1432_p11), %s361_s20, 64, %s363_s24, %s351_s15  }
  0x33   : > { %s1312_s2 = sshll.u32 (!%p1954_p3), %s2034_s18, 2  ;;  %s374_s26 = scalar_lea.sflag (!%p1954_p3), [#allocation7], %s2034_s18 }
  0x34   : > { %s377_s11 = scalar_lea.vmem (!%p1954_p3), [#allocation6], %s1312_s2 }
  0x36   : > { %1802 = dma.done.wait (%p2010_p13), %s374_s26, 64  }
  0x37   : > { %1804 = vsyncadd (%p2010_p13), %s374_s26, 4294967232 }
  0x38   : > { %1806 = dma.done.wait (%p1946_p1), [#allocation10], 512  }
  0x39   : > { %1808 = vsyncadd (%p1946_p1), [#allocation10], 4294966784 }
  0x3a   : > { %1810 = dma.done.wait (%p1946_p1), [#allocation13], 512  }
  0x3b   : > { %1812 = vsyncadd (%p1946_p1), [#allocation13], 4294966784 }
  0x3c   : > { %1814 = dma.done.wait (%p1946_p1), [#allocation16], 256  }
  0x3d   : > { %1816 = vsyncadd (%p1946_p1), [#allocation16], 4294967040  ;;  %v1377_v0 = vld [vmem:[#allocation9 + $0x8] sm:$0xff]  ;;  %v2054_v2 = vld [vmem:[#allocation15] sm:$0xff]  ;;  %s1853_s2 = smov 16   ;;  %vm473_vm0 = vcmask 261120  }
  0x3e   : > { %v1381_v1 = vld [vmem:[#allocation12 + $0x8] sm:$0xff]  ;;  %483 = vmatpush.bf16.msra.mxu0 %v1377_v0  ;;  %v1376_v3 = vld [vmem:[#allocation9] sm:$0xff]  ;;  %564 = vrot.lane.b32.xlu0 %v2054_v2, %s1853_s2  ;;  %v454_v5 = vld [vmem:[%s377_s11] sm:$0xf]  ;;  %s1854_s12 = smov 112   ;;  %vm603_vm1 = vcmask 257024  }
  0x3f   : > { %541 = vmatpush.bf16.msra.mxu2 %v1381_v1  ;;  %v1380_v4 = vld [vmem:[#allocation12] sm:$0xff]  ;;  %v2058_v6 = vld [vmem:[#allocation17] sm:$0xff]  ;;  %v1379_v7 = vld [vmem:[#allocation11 + $0x8] sm:$0xff]  ;;  %vm560_vm2 = vcmask 125952   ;;  %s1855_s16 = smov 108   ;;  %s1856_s19 = smov 124  }
  0x40   : > { %512 = vmatpush.bf16.msra.mxu1 %v1379_v7  ;;  %v1378_v8 = vld [vmem:[#allocation11] sm:$0xff]  ;;  %vm624_vm3 = vcmask 31744   ;;  %s1857_s1 = smov 104   ;;  %vm578_vm4 = vcmask 257152   ;;  %s1858_s3 = smov 120   ;;  %vm664_vm5 = vcmask 64512  }
  0x41   : > { %s1859_s14 = smov 100   ;;  %s1860_s17 = smov 116   ;;  %vm680_vm6 = vcmask 1043456   ;;  %vm720_vm7 = vcmask 27648   ;;  %vm728_vm8 = vcmask 158848   ;;  %vm841_vm9 = vcmask 60448  }
  0x42   : > { %484 = vmatpush.bf16.msra.mxu0 %v1376_v3  ;;  %s1861_s24 = smov 4   ;;  %s1862_s15 = smov 20   ;;  %vm849_vm10 = vcmask 191648   ;;  %vm962_vm11 = vcmask 93248   ;;  %vm970_vm12 = vcmask 224448   ;;  %vm1083_vm13 = vcmask 126048  }
  0x43   : > { %542 = vmatpush.bf16.msra.mxu2 %v1380_v4  ;;  %s1863_s26 = smov 8   ;;  %s1864_s11 = smov 24   ;;  %vm1091_vm14 = vcmask 257248  }
  0x44   : > { %513 = vmatpush.bf16.msra.mxu1 %v1378_v8 }
  0x45   : > { %1328 = vmatmul.msk.bf16.vlgmr.msra.gmra.mxu0 %vm473_vm0, %v454_v5 }
  0x46   : > { %1346 = vmatmul.msk.bf16.vlgmr.msra.gmra.mxu2 %vm473_vm0, %v454_v5  ;;  %550 = vrot.lane.b32.xlu0 %v2058_v6, %s1853_s2 }
  0x47   : > { %1337 = vmatmul.msk.bf16.vlgmr.msra.gmra.mxu1 %vm473_vm0, %v454_v5 }
  0xb0   : > { %v2065_v9 = vpop.permute.xlu0 %564 }
  0xb8   : > { %v551_v12 = vpop.permute.xlu0 %550 }
  0xc2   : > { %v486_v10 = vpop.f32.mrf.mxu0 }
  0xc3   : > { %v567_v11 = vmul.f32 %v2065_v9, %v486_v10  ;;  %v553_v15 = vmul.f32 %v551_v12, %v486_v10  ;;  %v562_v19 = vmul.f32 %v486_v10, %v2058_v6  ;;  %v548_v26 = vmul.f32 %v486_v10, %v2054_v2 }
  0xc4   : > { %v515_v17 = vpop.f32.mrf.mxu1 }
  0xc5   : > { %569 = vrot.lane.b32.xlu1 %v567_v11, %s1854_s12  ;;  %v602_v18 = vpack.c.bf16 %v515_v17, %v515_v17 }
  0xc7   : > { %604 = vst.msk [vmem:[#allocation3] sm:$0xf] %vm603_vm1, %v602_v18 }
  0xc9   : > { %v2069_v13 = vpop.f32.mrf.mxu2 }
  0xca   : > { %v488_v14 = vpop.f32.mrf.mxu0  ;;  %v581_v47 = vmul.f32 %v551_v12, %v2069_v13  ;;  %v590_v50 = vmul.f32 %v2065_v9, %v2069_v13  ;;  %v580_v56 = vmul.f32 %v2069_v13, %v2054_v2  ;;  %v589_v8 = vmul.f32 %v2069_v13, %v2058_v6  ;;  %v611_v6 = vld [vmem:[%s2200_s5] sm:$0xf] }
  0xcb   : > { %v612_v13 = vunpack.c.l.bf16 %v611_v6 }
  0xcc   : > { %v517_v23 = vpop.f32.mrf.mxu1 }
  0xcd   : > { %555 = vrot.lane.b32.xlu1 %v553_v15, %s1854_s12 }
  0xce   : > { %v613_v24 = vld [vmem:[#allocation3] sm:$0xf] }
  0xcf   : > { %v730_v25 = vld [vmem:[#allocation3] sm:$0xf]  ;;  %v620_v27 = vunpack.c.l.b16 %v613_v24  ;;  %v648_v35 = vsel %vm624_vm3, %v613_v24, 0 }
  0xd0   : > { %v734_v28 = vunpack.c.l.b16 %v730_v25  ;;  %v851_v34 = vld [vmem:[#allocation3] sm:$0xf]  ;;  %657 = vmatpush.bf16.xpose.msrb.mxu0 %v648_v35 }
  0xd1   : > { %v546_v16 = vpop.f32.mrf.mxu2  ;;  %v621_v31 = vpack.c.b16 %v620_v27, %v620_v27  ;;  %v855_v36 = vunpack.c.l.b16 %v851_v34  ;;  %v972_v43 = vld [vmem:[#allocation3] sm:$0xf] }
  0xd2   : > { %v735_v32 = vpack.c.b16 %v734_v28, %v734_v28  ;;  %v976_v45 = vunpack.c.l.b16 %v972_v43 }
  0xd3   : > { %v856_v37 = vpack.c.b16 %v855_v36, %v855_v36 }
  0xd4   : > { %v977_v48 = vpack.c.b16 %v976_v45, %v976_v45 }
  0xd5   : > { %736 = vrot.lane.b32.xlu1 %v735_v32, %s1855_s16 }
 0x137   : > { %v570_v20 = vpop.permute.xlu1 %569 }
 0x138   : > { %v572_v21 = vadd.f32 %v570_v20, %v562_v19 }
 0x13a   : > { %v573_v22 = vpack.c.bf16 %v572_v21, %v572_v21 }
 0x13c   : > { %575 = vrot.lane.b32.xlu2 %v573_v22, %s1853_s2 }
 0x13f   : > { %v556_v29 = vpop.permute.xlu1 %555 }
 0x140   : > { %v558_v30 = vsub.f32 %v548_v26, %v556_v29 }
 0x142   : > { %v559_v33 = vpack.c.bf16 %v558_v30, %v558_v30 }
 0x144   : > { %561 = vst.msk [vmem:[#allocation2] sm:$0xf] %vm560_vm2, %v559_v33  ;;  %622 = vrot.lane.b32.xlu2 %v621_v31, %s1854_s12 }
 0x147   : > { %v737_v51 = vpop.permute.xlu1 %736 }
 0x148   : > { %v742_v52 = vsel %vm624_vm3, %v737_v51, 0 }
 0x14c   : > { %759 = vrot.lane.b32.xlu2 %v735_v32, %s1856_s19 }
 0x154   : > { %857 = vrot.lane.b32.xlu2 %v856_v37, %s1857_s1 }
 0x196   : > { %v576_v38 = vpop.permute.xlu2 %575 }
 0x197   : > { %579 = vst.msk [vmem:[#allocation2] sm:$0xf] %vm578_vm4, %v576_v38 }
 0x19e   : > { %v610_v39 = vld [vmem:[#allocation2] sm:$0xf]  ;;  %v623_v42 = vpop.permute.xlu2 %622 }
 0x19f   : > { %v615_v40 = vunpack.c.l.b16 %v610_v39  ;;  %1348 = vmatmul.msk.bf16.vlgmr.msrb.gmra.mxu0 %vm624_vm3, %v610_v39  ;;  %v629_v49 = vsel %vm624_vm3, %v623_v42, 0 }
 0x1a0   : > { %638 = vmatpush.bf16.xpose.msra.mxu3 %v629_v49 }
 0x1a1   : > { %v616_v41 = vpack.c.b16 %v615_v40, %v615_v40 }
 0x1a3   : > { %878 = vrot.lane.b32.xlu2 %v616_v41, %s1858_s3  ;;  %757 = vrot.lane.b32.xlu1 %v616_v41, %s1856_s19 }
 0x1a4   : > { %617 = vrot.lane.b32.xlu0 %v616_v41, %s1854_s12 }
 0x1a6   : > { %v760_v44 = vpop.permute.xlu2 %759 }
 0x1a7   : > { %v765_v46 = vsel %vm624_vm3, %v760_v44, 0 }
 0x1a8   : > { %774 = vmatpush.bf16.xpose.msra.mxu0 %v765_v46  ;;  %751 = vmatpush.bf16.xpose.msrb.mxu3 %v742_v52 }
 0x1ab   : > { %973 = vrot.lane.b32.xlu2 %v616_v41, %s1859_s14  ;;  %852 = vrot.lane.b32.xlu1 %v616_v41, %s1857_s1 }
 0x1ac   : > { %731 = vrot.lane.b32.xlu0 %v616_v41, %s1855_s16 }
 0x1ae   : > { %v858_v53 = vpop.permute.xlu2 %857 }
 0x1af   : > { %v863_v62 = vsel %vm624_vm3, %v858_v53, 0 }
 0x1b3   : > { %583 = vrot.lane.b32.xlu2 %v581_v47, %s1854_s12  ;;  %1001 = vrot.lane.b32.xlu1 %v977_v48, %s1860_s17 }
 0x1b4   : > { %880 = vrot.lane.b32.xlu0 %v856_v37, %s1858_s3 }
 0x1bb   : > { %592 = vrot.lane.b32.xlu1 %v590_v50, %s1854_s12 }
 0x1bc   : > { %978 = vrot.lane.b32.xlu0 %v977_v48, %s1859_s14 }
 0x1c4   : > { %999 = vrot.lane.b32.xlu0 %v616_v41, %s1860_s17 }
 0x1fd   : > { %v879_v54 = vpop.permute.xlu2 %878 }
 0x205   : > { %v974_v55 = vpop.permute.xlu2 %973 }
 0x20d   : > { %v584_v57 = vpop.permute.xlu2 %583 }
 0x20e   : > { %v586_v58 = vsub.f32 %v580_v56, %v584_v57 }
 0x210   : > { %v587_v59 = vpack.c.bf16 %v586_v58, %v586_v58 }
 0x212   : > { %588 = vst.msk [vmem:[#allocation4] sm:$0xf] %vm560_vm2, %v587_v59 }
 0x215   : > { %v758_v60 = vpop.permute.xlu1 %757 }
 0x216   : > { %v618_v61 = vpop.permute.xlu0 %617  ;;  %1352 = vmatmul.msk.bf16.vlgmr.msra.gmra.mxu0 %vm624_vm3, %v758_v60 }
 0x217   : > { %1347 = vmatmul.msk.bf16.vlgmr.msra.gmra.mxu3 %vm624_vm3, %v618_v61 }
 0x218   : > { %872 = vmatpush.bf16.xpose.msra.mxu3 %v863_v62 }
 0x21c   : > { %v659_v63 = vpop.f32.mrf.mxu0 }
 0x21d   : > { %v853_v0 = vpop.permute.xlu1 %852 }
 0x21e   : > { %v732_v1 = vpop.permute.xlu0 %731 }
 0x224   : > { %v661_v3 = vpop.f32.mrf.mxu0 }
 0x225   : > { %v1002_v4 = vpop.permute.xlu1 %1001 }
 0x226   : > { %v1007_v2 = vsel %vm624_vm3, %v1002_v4, 0  ;;  %v881_v5 = vpop.permute.xlu0 %880 }
 0x227   : > { %v886_v7 = vsel %vm624_vm3, %v881_v5, 0  ;;  %1351 = vmatmul.msk.bf16.vlgmr.msrb.gmra.mxu3 %vm624_vm3, %v732_v1 }
 0x228   : > { %895 = vmatpush.bf16.xpose.msrb.mxu0 %v886_v7 }
 0x22d   : > { %v593_v9 = vpop.permute.xlu1 %592 }
 0x22e   : > { %v595_v10 = vadd.f32 %v593_v9, %v589_v8  ;;  %v979_v11 = vpop.permute.xlu0 %978 }
 0x22f   : > { %v984_v12 = vsel %vm624_vm3, %v979_v11, 0  ;;  %1356 = vmatmul.msk.bf16.vlgmr.msrb.gmra.mxu0 %vm624_vm3, %v879_v54 }
 0x230   : > { %1016 = vmatpush.bf16.xpose.msra.mxu0 %v1007_v2  ;;  %v596_v14 = vpack.c.bf16 %v595_v10, %v595_v10  ;;  %993 = vmatpush.bf16.xpose.msrb.mxu3 %v984_v12 }
 0x232   : > { %598 = vrot.lane.b32.xlu0 %v596_v14, %s1853_s2 }
 0x236   : > { %v1000_v15 = vpop.permute.xlu0 %999 }
 0x237   : > { %1355 = vmatmul.msk.bf16.vlgmr.msra.gmra.mxu3 %vm624_vm3, %v853_v0 }
 0x23f   : > { %1360 = vmatmul.msk.bf16.vlgmr.msra.gmra.mxu0 %vm624_vm3, %v1000_v15 }
 0x247   : > { %1359 = vmatmul.msk.bf16.vlgmr.msrb.gmra.mxu3 %vm624_vm3, %v974_v55 }
 0x293   : > { %v776_v16 = vpop.f32.mrf.mxu0 }
 0x29a   : > { %v640_v17 = vpop.f32.mrf.mxu3 }
 0x29b   : > { %v660_v18 = vadd.f32 %v659_v63, %v640_v17  ;;  %v778_v19 = vpop.f32.mrf.mxu0 }
 0x29d   : > { %v663_v20 = vadd.f32 %v660_v18, %v612_v13 }
 0x29f   : > { %v665_v21 = vsel %vm664_vm5, %v663_v20, -inf }
 0x2a0   : > { %666 = vmax.xlane.f32.xlu1 %v665_v21 }
 0x2a2   : > { %v642_v22 = vpop.f32.mrf.mxu3 }
 0x2a4   : > { %v599_v23 = vpop.permute.xlu0 %598 }
 0x2a5   : > { %601 = vst.msk [vmem:[#allocation4] sm:$0xf] %vm578_vm4, %v599_v23 }
 0x2aa   : > { %v753_v24 = vpop.f32.mrf.mxu3 }
 0x2ab   : > { %v777_v25 = vadd.f32 %v776_v16, %v753_v24 }
 0x2ac   : > { %v897_v26 = vpop.f32.mrf.mxu0  ;;  %v676_v27 = vld [vmem:[#allocation4] sm:$0xf] }
 0x2ad   : > { %v682_v28 = vsel %vm680_vm6, %v676_v27, 0  ;;  %v698_v29 = vunpack.c.l.b16 %v676_v27  ;;  %v780_v30 = vadd.f32 %v777_v25, %v612_v13  ;;  %v913_v33 = vld [vmem:[#allocation4] sm:$0xf] }
 0x2ae   : > { %691 = vmatpush.bf16.msrb.mxu1 %v682_v28  ;;  %v792_v34 = vld [vmem:[#allocation4] sm:$0xf]  ;;  %v915_v36 = vunpack.c.l.b16 %v913_v33 }
 0x2af   : > { %v699_v31 = vpack.c.b16 %v698_v29, %v698_v29  ;;  %v781_v32 = vsel %vm664_vm5, %v780_v30, -inf  ;;  %v794_v37 = vunpack.c.l.b16 %v792_v34  ;;  %v1034_v41 = vld [vmem:[#allocation4] sm:$0xf] }
 0x2b0   : > { %782 = vmax.xlane.f32.xlu0 %v781_v32  ;;  %v916_v39 = vpack.c.b16 %v915_v36, %v915_v36  ;;  %v1036_v43 = vunpack.c.l.b16 %v1034_v41 }
 0x2b1   : > { %700 = vrot.lane.b32.xlu2 %v699_v31, %s1854_s12  ;;  %v795_v40 = vpack.c.b16 %v794_v37, %v794_v37  ;;  %s1866_s12 = smov 28  }
 0x2b2   : > { %v755_v35 = vpop.f32.mrf.mxu3  ;;  %v1037_v45 = vpack.c.b16 %v1036_v43, %v1036_v43 }
 0x2b4   : > { %v899_v38 = vpop.f32.mrf.mxu0 }
 0x2b9   : > { %938 = vrot.lane.b32.xlu1 %v916_v39, %s1857_s1  ;;  %817 = vrot.lane.b32.xlu2 %v795_v40, %s1855_s16  ;;  %s1373_s16 = sshll.u32 %s1835_s30, 3 }
 0x2ba   : > { %v874_v42 = vpop.f32.mrf.mxu3 }
 0x2bb   : > { %v898_v50 = vadd.f32 %v897_v26, %v874_v42 }
 0x2bc   : > { %v1018_v44 = vpop.f32.mrf.mxu0 }
 0x2bd   : > { %v901_v51 = vadd.f32 %v898_v50, %v612_v13 }
 0x2bf   : > { %v902_v53 = vsel %vm664_vm5, %v901_v51, -inf }
 0x2c1   : > { %1059 = vrot.lane.b32.xlu1 %v1037_v45, %s1859_s14  ;;  %796 = vrot.lane.b32.xlu2 %v795_v40, %s1856_s19  ;;  %s1319_s19 = sshll.u32 %s2034_s18, 3  ;;  %s1140_s14 = scalar_lea.hbm %s2203_s8, %s1373_s16 }
 0x2c2   : > { %v876_v46 = vpop.f32.mrf.mxu3  ;;  %s1144_s23 = sshll.u32 %s1140_s14, 4  ;;  %s1145_s23 = int_to_ptr.hbm [resolvable:$true] %s1144_s23 }
 0x2c4   : > { %v1020_v47 = vpop.f32.mrf.mxu0  ;;  %917 = vrot.lane.b32.xlu0 %v916_v39, %s1858_s3 }
 0x2ca   : > { %v995_v48 = vpop.f32.mrf.mxu3 }
 0x2cb   : > { %v1019_v52 = vadd.f32 %v1018_v44, %v995_v48 }
 0x2cc   : > { %1038 = vrot.lane.b32.xlu0 %v1037_v45, %s1860_s17  ;;  %s444_s17 = scalar_lea.vmem [#allocation18], %s1319_s19 }
 0x2cd   : > { %v1022_v54 = vadd.f32 %v1019_v52, %v612_v13  ;;  %s1142_s20 = sshll.u32 %s444_s17, 4  ;;  %s1143_s20 = int_to_ptr.vmem [resolvable:$true] %s1142_s20 }
 0x2cf   : > { %v1023_v55 = vsel %vm664_vm5, %v1022_v54, -inf }
 0x2d2   : > { %v997_v49 = vpop.f32.mrf.mxu3 }
 0x2ea   : > { %903 = vmax.xlane.f32.xlu2 %v902_v53 }
 0x2f2   : > { %1024 = vmax.xlane.f32.xlu2 %v1023_v55 }
 0x30b   : > { %v701_v56 = vpop.permute.xlu2 %700 }
 0x30c   : > { %v703_v57 = vsel %vm680_vm6, %v701_v56, 0 }
 0x30d   : > { %712 = vmatpush.bf16.msrb.mxu2 %v703_v57 }
 0x313   : > { %v667_v58 = vpop.xlane.xlu1 %666  ;;  %v818_v59 = vpop.permute.xlu2 %817 }
 0x314   : > { %v668_v60 = vsub.f32 %v663_v20, %v667_v58  ;;  %v820_v61 = vsel %vm680_vm6, %v818_v59, 0 }
 0x315   : > { %829 = vmatpush.bf16.msra.mxu2 %v820_v61 }
 0x316   : > { %v669_v62 = vmul.f32 1.442695, %v668_v60 }
 0x318   : > { %1523 = vpow2.f32 %v669_v62 }
 0x31b   : > { %v797_v63 = vpop.permute.xlu2 %796 }
 0x31c   : > { %v802_v0 = vsel %vm680_vm6, %v797_v63, 0 }
 0x31d   : > { %811 = vmatpush.bf16.msra.mxu1 %v802_v0 }
 0x31e   : > { %v1524_v1 = vpop.eup %1523 }
 0x31f   : > { %v671_v3 = vsel %vm664_vm5, %v1524_v1, 0.0  ;;  %v675_v4 = vpack.c.bf16 %v1524_v1, %v1524_v1 }
 0x320   : > { %672 = vadd.xlane.f32.xlu2 %v671_v3 }
 0x321   : > { %1349 = vmatmul.msk.bf16.vlgmr.msrb.gmra.mxu1 %vm664_vm5, %v675_v4  ;;  %1350 = vmatmul.msk.bf16.vlgmr.msrb.gmra.mxu2 %vm664_vm5, %v675_v4 }
 0x323   : > { %v783_v2 = vpop.xlane.xlu0 %782 }
 0x324   : > { %v784_v5 = vsub.f32 %v780_v30, %v783_v2 }
 0x326   : > { %v785_v7 = vmul.f32 1.442695, %v784_v5 }
 0x328   : > { %1525 = vpow2.f32 %v785_v7 }
 0x32b   : > { %v939_v8 = vpop.permute.xlu1 %938 }
 0x32c   : > { %v941_v9 = vsel %vm680_vm6, %v939_v8, 0 }
 0x32d   : > { %950 = vmatpush.bf16.msrb.mxu2 %v941_v9 }
 0x32e   : > { %v1526_v10 = vpop.eup %1525 }
 0x32f   : > { %v791_v11 = vpack.c.bf16 %v1526_v10, %v1526_v10  ;;  %v787_v12 = vsel %vm664_vm5, %v1526_v10, 0.0  ;;  %v1383_v10 = vld [vmem:[#allocation14 + $0x8] sm:$0xff] }
 0x330   : > { %788 = vadd.xlane.f32.xlu1 %v787_v12  ;;  %1120 = vmatpush.bf16.msra.mxu3 %v1383_v10 }
 0x331   : > { %1353 = vmatmul.msk.bf16.vlgmr.msra.gmra.mxu1 %vm664_vm5, %v791_v11  ;;  %1354 = vmatmul.msk.bf16.vlgmr.msra.gmra.mxu2 %vm664_vm5, %v791_v11  ;;  %v1382_v11 = vld [vmem:[#allocation14] sm:$0xff] }
 0x333   : > { %v1060_v14 = vpop.permute.xlu1 %1059 }
 0x334   : > { %v1062_v15 = vsel %vm680_vm6, %v1060_v14, 0  ;;  %1121 = vmatpush.bf16.msra.mxu3 %v1382_v11 }
 0x335   : > { %1071 = vmatpush.bf16.msra.mxu2 %v1062_v15 }
 0x336   : > { %v918_v16 = vpop.permute.xlu0 %917 }
 0x337   : > { %v923_v6 = vsel %vm680_vm6, %v918_v16, 0 }
 0x338   : > { %932 = vmatpush.bf16.msrb.mxu1 %v923_v6 }
 0x33e   : > { %v1039_v13 = vpop.permute.xlu0 %1038 }
 0x33f   : > { %v1044_v17 = vsel %vm680_vm6, %v1039_v13, 0 }
 0x340   : > { %1053 = vmatpush.bf16.msra.mxu1 %v1044_v17 }
 0x35d   : > { %v904_v18 = vpop.xlane.xlu2 %903 }
 0x35e   : > { %v905_v19 = vsub.f32 %v901_v51, %v904_v18 }
 0x360   : > { %v906_v20 = vmul.f32 1.442695, %v905_v19 }
 0x362   : > { %1527 = vpow2.f32 %v906_v20 }
 0x365   : > { %v1025_v21 = vpop.xlane.xlu2 %1024 }
 0x366   : > { %v1026_v22 = vsub.f32 %v1022_v54, %v1025_v21 }
 0x368   : > { %v1528_v23 = vpop.eup %1527  ;;  %v1027_v24 = vmul.f32 1.442695, %v1026_v22 }
 0x369   : > { %v912_v25 = vpack.c.bf16 %v1528_v23, %v1528_v23  ;;  %v908_v26 = vsel %vm664_vm5, %v1528_v23, 0.0 }
 0x36a   : > { %1529 = vpow2.f32 %v1027_v24  ;;  %909 = vadd.xlane.f32.xlu0 %v908_v26 }
 0x36b   : > { %1357 = vmatmul.msk.bf16.vlgmr.msrb.gmra.mxu1 %vm664_vm5, %v912_v25  ;;  %1358 = vmatmul.msk.bf16.vlgmr.msrb.gmra.mxu2 %vm664_vm5, %v912_v25 }
 0x370   : > { %v1530_v27 = vpop.eup %1529 }
 0x371   : > { %v1029_v28 = vsel %vm664_vm5, %v1530_v27, 0.0  ;;  %v1033_v29 = vpack.c.bf16 %v1530_v27, %v1530_v27 }
 0x372   : > { %1030 = vadd.xlane.f32.xlu2 %v1029_v28 }
 0x37b   : > { %1361 = vmatmul.msk.bf16.vlgmr.msra.gmra.mxu1 %vm664_vm5, %v1033_v29  ;;  %1362 = vmatmul.msk.bf16.vlgmr.msra.gmra.mxu2 %vm664_vm5, %v1033_v29 }
 0x393   : > { %v673_v30 = vpop.xlane.xlu2 %672 }
 0x394   : > { %1531 = vrcp.f32 %v673_v30 }
 0x39a   : > { %v1532_v31 = vpop.eup %1531 }
 0x39e   : > { %v693_v32 = vpop.f32.mrf.mxu1 }
 0x39f   : > { %v718_v33 = vmul.f32 %v1532_v31, %v693_v32 }
 0x3a1   : > { %v719_v34 = vpack.c.bf16 %v718_v33, %v718_v33 }
 0x3a3   : > { %721 = vst.msk [vmem:[#allocation5] sm:$0xf] %vm720_vm7, %v719_v34  ;;  %v789_v36 = vpop.xlane.xlu1 %788 }
 0x3a4   : > { %v714_v35 = vpop.f32.mrf.mxu2  ;;  %1533 = vrcp.f32 %v789_v36 }
 0x3a5   : > { %v722_v37 = vmul.f32 %v1532_v31, %v714_v35 }
 0x3a6   : > { %v695_v38 = vpop.f32.mrf.mxu1 }
 0x3a7   : > { %v723_v39 = vpack.c.bf16 %v722_v37, %v722_v37 }
 0x3a9   : > { %725 = vrot.lane.b32.xlu2 %v723_v39, %s1853_s2  ;;  %s1865_s2 = smov 12  }
 0x3aa   : > { %v1534_v41 = vpop.eup %1533 }
 0x3ac   : > { %v716_v40 = vpop.f32.mrf.mxu2 }
 0x3ae   : > { %v813_v42 = vpop.f32.mrf.mxu1 }
 0x3af   : > { %v835_v43 = vmul.f32 %v1534_v41, %v813_v42 }
 0x3b1   : > { %v836_v44 = vpack.c.bf16 %v835_v43, %v835_v43 }
 0x3b3   : > { %838 = vrot.lane.b32.xlu2 %v836_v44, %s1861_s24  ;;  %s1129_s24 = scalar_lea.sflag [#allocation8], %s2034_s18 }
 0x3b4   : > { %v831_v45 = vpop.f32.mrf.mxu2 }
 0x3b5   : > { %v843_v46 = vmul.f32 %v1534_v41, %v831_v45 }
 0x3b6   : > { %v815_v47 = vpop.f32.mrf.mxu1 }
 0x3b7   : > { %v844_v48 = vpack.c.bf16 %v843_v46, %v843_v46 }
 0x3b9   : > { %846 = vrot.lane.b32.xlu1 %v844_v48, %s1862_s15  ;;  %s1763_s15 = sshra.s32 %s1145_s23, 4  ;;  %s1764_s15 = int_to_ptr.hbm [resolvable:$true] %s1763_s15 }
 0x3ba   : > { %p1770_p9 = scmp.lt.s32.totalorder %s1764_s15, %s2203_s8 }
 0x3bc   : > { %v833_v49 = vpop.f32.mrf.mxu2 }
 0x3dd   : > { %v910_v50 = vpop.xlane.xlu0 %909 }
 0x3de   : > { %1535 = vrcp.f32 %v910_v50 }
 0x3e4   : > { %v1536_v51 = vpop.eup %1535 }
 0x3e5   : > { %v1031_v56 = vpop.xlane.xlu2 %1030 }
 0x3e6   : > { %1537 = vrcp.f32 %v1031_v56 }
 0x3e8   : > { %v934_v52 = vpop.f32.mrf.mxu1 }
 0x3e9   : > { %v956_v53 = vmul.f32 %v1536_v51, %v934_v52 }
 0x3eb   : > { %v957_v54 = vpack.c.bf16 %v956_v53, %v956_v53 }
 0x3ec   : > { %v1538_v61 = vpop.eup %1537 }
 0x3ed   : > { %959 = vrot.lane.b32.xlu0 %v957_v54, %s1863_s26  ;;  %s1765_s26 = scalar_lea.hbm %s1764_s15, 8 }
 0x3ee   : > { %v952_v55 = vpop.f32.mrf.mxu2  ;;  %p1766_p1 = scmp.ne.s32.totalorder %s1764_s15, %s1765_s26 }
 0x3ef   : > { %v964_v57 = vmul.f32 %v1536_v51, %v952_v55 }
 0x3f0   : > { %v936_v58 = vpop.f32.mrf.mxu1  ;;  %p1767_p3 = pnand %p1766_p1, %p2014_p0 }
 0x3f1   : > { %v965_v59 = vpack.c.bf16 %v964_v57, %v964_v57 }
 0x3f2   : > { %p1768_p8 = pneg %p1767_p3 }
 0x3f3   : > { %967 = vrot.lane.b32.xlu2 %v965_v59, %s1864_s11 }
 0x3f6   : > { %v954_v60 = vpop.f32.mrf.mxu2 }
 0x3f8   : > { %v1055_v62 = vpop.f32.mrf.mxu1 }
 0x3f9   : > { %v1077_v63 = vmul.f32 %v1538_v61, %v1055_v62 }
 0x3fb   : > { %v1078_v0 = vpack.c.bf16 %v1077_v63, %v1077_v63 }
 0x3fd   : > { %1080 = vrot.lane.b32.xlu2 %v1078_v0, %s1865_s2  ;;  %s1769_s2 = scalar_lea.hbm %s2203_s8, 16 }
 0x3fe   : > { %v1073_v1 = vpop.f32.mrf.mxu2  ;;  %p1771_p10 = scmp.lt.s32.totalorder %s1769_s2, %s1765_s26 }
 0x3ff   : > { %v1085_v3 = vmul.f32 %v1538_v61, %v1073_v1 }
 0x400   : > { %v1057_v4 = vpop.f32.mrf.mxu1  ;;  %p1772_p12 = por %p1771_p10, %p1770_p9 }
 0x401   : > { %v1086_v2 = vpack.c.bf16 %v1085_v3, %v1085_v3 }
 0x402   : > { %p1773_p13 = pnand %p1772_p12, %p1768_p8 }
 0x403   : > { %v726_v5 = vpop.permute.xlu2 %725 }
 0x404   : > { %729 = vst.msk [vmem:[#allocation5] sm:$0xf] %vm728_vm8, %v726_v5 }
 0x405   : > { %1088 = vrot.lane.b32.xlu2 %v1086_v2, %s1866_s12 }
 0x406   : > { %v1075_v7 = vpop.f32.mrf.mxu2 }
 0x40d   : > { %v839_v8 = vpop.permute.xlu2 %838 }
 0x40e   : > { %842 = vst.msk [vmem:[#allocation5] sm:$0xf] %vm841_vm9, %v839_v8 }
 0x42b   : > { %v847_v9 = vpop.permute.xlu1 %846 }
 0x42c   : > { %850 = vst.msk [vmem:[#allocation5] sm:$0xf] %vm849_vm10, %v847_v9 }
 0x44d   : > { %v968_v12 = vpop.permute.xlu2 %967 }
 0x457   : > { %v1081_v14 = vpop.permute.xlu2 %1080 }
 0x45f   : > { %v960_v15 = vpop.permute.xlu0 %959  ;;  %v1089_v16 = vpop.permute.xlu2 %1088 }
 0x460   : > { %963 = vst.msk [vmem:[#allocation5] sm:$0xf] %vm962_vm11, %v960_v15 }
 0x461   : > { %971 = vst.msk [vmem:[#allocation5] sm:$0xf] %vm970_vm12, %v968_v12 }
 0x462   : > { %1084 = vst.msk [vmem:[#allocation5] sm:$0xf] %vm1083_vm13, %v1081_v14 }
 0x463   : > { %1092 = vst.msk [vmem:[#allocation5] sm:$0xf] %vm1091_vm14, %v1089_v16 }
 0x46a   : > { %v1093_v6 = vld [vmem:[#allocation5] sm:$0xf] }
 0x46b   : > { %1371 = vmatmul.msk.bf16.vlgmr.msra.gmra.mxu3 %vm473_vm0, %v1093_v6 }
 0x4ee   : > { %v1123_v13 = vpop.f32.mrf.mxu3 }
 0x4ef   : > { %1127 = vst.msk [vmem:[%s444_s17] sm:$0xff] %vm473_vm0, %v1123_v13 }
 0x4f0   : > { %1776 = shalt.err (!%p1773_p13)
}
 0x4f1   : > { %1410 = dma.vmem_to_hbm [thread:$0]  (%p2014_p0), %s1143_s20, 128, %s1145_s23, %s1129_s24  }
 0x4f6   : > { %v1125_v17 = vpop.f32.mrf.mxu3 }
 0x4f7 PF: > { %s1156_s18 = sand.u32 1, %s1823_s27   ;;  %p1436_p2 = pnand %p1308_p6, %p2021_p5 }
 0x4f8   : > { %s1157_s19 = scalar_lea.sflag [#allocation8], %s1156_s18 }
 0x4f9   : > { %p1437_p4 = pneg %p1436_p2 }
 0x4fb   : > { %1818 = dma.done.wait (%p1437_p4), %s1157_s19, 128  }
 0x4fc   : > { %1820 = vsyncadd (%p1437_p4), %s1157_s19, 4294967168  ;;  %s27_s10 = sadd.s32 1, %s1843_s10   ;;  %s2218_s27 = smov %s1827_s28 }
 0x4fd   : > { %p24_p7 = scmp.ge.s32.totalorder %s27_s10, 4   ;;  %s2219_s28 = smov %s1831_s29 }
 0x4fe   : > { %s2220_s29 = smov %s2019_s13  ;;  %s2221_s30 = smov %s1839_s9 }
 0x4ff   : > { %s2222_s9 = smov %s2224_s21  ;;  %26 = sbr.rel (!%p24_p7) target bundleno = 13 (0xd), region = 129 }
 0x504   :  { %1163 = vsyncpa [#allocation7], 1 }
 0x505   :  { %1165 = vsyncpa [#allocation7 + $0x1], 1 }
 0x506   :  { %1166 = vsyncpa [#allocation10], 1 }
 0x507   :  { %1167 = vsyncpa [#allocation13], 1 }
 0x508   :  { %1168 = vsyncpa [#allocation16], 1 }
 0x509   :  { %1169 = vsyncpa [#allocation8], 1 }
 0x50a   :  { %1171 = vsyncpa [#allocation8 + $0x1], 1 }

</bundles_post_ra>
